<compile_context>
chip_gen: v7x
topology: tpu7x:2x2x1
jax: 0.10.0
libtpu: 0.0.40
codegen_flags: <defaults>
</compile_context>

<pallas_src>
import math
import functools

import jax
import jax.numpy as jnp
from jax import lax
from jax.experimental import pallas as pl
from jax.experimental.pallas import tpu as pltpu

LN_EPS = 1e-5
NEG_INF = -1e9


@functools.lru_cache(maxsize=1)
def _vmem_limit_bytes():
    # Generation-aware VMEM cap: ~80% of physical, clipped at 112 MiB.
    try:
        cap = int(pltpu.get_tpu_info().vmem_capacity_bytes)
        return min(int(cap * 0.8), 112 * 1024 * 1024)
    except Exception:
        return 48 * 1024 * 1024


def _pick_tile(n, prefs=(512, 256, 128)):
    for p in prefs:
        if n % p == 0:
            return p
    return n


def _layer_norm(x, gamma, beta):
    # x: (..., H), gamma/beta: (1, H) -> broadcast over leading dims (fp32)
    mu = jnp.mean(x, axis=-1, keepdims=True)
    var = jnp.mean((x - mu) ** 2, axis=-1, keepdims=True)
    return (x - mu) * lax.rsqrt(var + LN_EPS) * gamma + beta


def _gelu_new(x):
    # GPT-Neo "gelu_new" (tanh approximation)
    c = math.sqrt(2.0 / math.pi)
    return 0.5 * x * (1.0 + jnp.tanh(c * (x + 0.044715 * x * x * x)))


# ---------------------------------------------------------------------------
# Fused GPT-Neo transformer block kernel (grid over batch, "parallel").
# ---------------------------------------------------------------------------
def gptneo_block_kernel(num_heads, kv_chunk,
                        x_ref, addmask_ref,
                        ln1g_ref, ln1b_ref,
                        wqkv_ref, wo3_ref, bo_ref,
                        ln2g_ref, ln2b_ref,
                        wfc_ref, bfc_ref, wproj_ref, bproj_ref,
                        out_ref):
    x = x_ref[0]                                   # (T, H) fp32, one batch row
    T, H = x.shape
    hd = H // num_heads

    # ---- LN1 + fused QKV projection (GPT-Neo attn projections have no bias) ----
    h1 = _layer_norm(x, ln1g_ref[...], ln1b_ref[...])
    qkv = jnp.dot(h1.astype(jnp.bfloat16), wqkv_ref[...],
                  preferred_element_type=jnp.float32)          # (T, 3H) fp32 accum

    # ---- combined causal + key-padding additive bias, built ONCE per KV chunk
    #      and reused by every head ----
    amask = addmask_ref[0]                                      # (1, T) additive
    n_chunks = -(-T // kv_chunk)
    chunk_span, chunk_bias = [], []
    for c in range(n_chunks):
        c0 = c * kv_chunk
        w = min(kv_chunk, T - c0)
        qi = lax.broadcasted_iota(jnp.int32, (T, w), 0)
        kj = lax.broadcasted_iota(jnp.int32, (T, w), 1) + c0
        chunk_bias.append(jnp.where(qi >= kj, amask[:, c0:c0 + w],
                                    jnp.float32(NEG_INF)))      # (T, w)
        chunk_span.append((c0, w))

    # ---- attention: per-head online softmax over KV chunks, with the output
    #      projection fused into the head loop (no ctx concat / materialization).
    #      HF GPT-Neo computes QK^T in fp32 and does NOT scale by 1/sqrt(hd). ----
    attn_acc = jnp.zeros((T, H), jnp.float32)
    for hh in range(num_heads):
        q_h = qkv[:, hh * hd:(hh + 1) * hd]                     # (T, hd) fp32
        k_h = qkv[:, H + hh * hd:H + (hh + 1) * hd]             # (T, hd) fp32
        v_h = qkv[:, 2 * H + hh * hd:2 * H + (hh + 1) * hd].astype(jnp.bfloat16)

        m_i = jnp.full((T, 1), -jnp.inf, jnp.float32)
        l_i = jnp.zeros((T, 1), jnp.float32)
        acc = jnp.zeros((T, hd), jnp.float32)
        for c in range(n_chunks):
            c0, w = chunk_span[c]
            s = lax.dot_general(q_h, k_h[c0:c0 + w, :],
                                (((1,), (1,)), ((), ())),
                                preferred_element_type=jnp.float32)   # (T, w)
            s = s + chunk_bias[c]
            m_new = jnp.maximum(m_i, jnp.max(s, axis=-1, keepdims=True))
            alpha = jnp.exp(m_i - m_new)
            p = jnp.exp(s - m_new)
            l_i = alpha * l_i + jnp.sum(p, axis=-1, keepdims=True)
            acc = alpha * acc + jnp.dot(p.astype(jnp.bfloat16),
                                        v_h[c0:c0 + w, :],
                                        preferred_element_type=jnp.float32)
            m_i = m_new
        ctx_h = acc * pl.reciprocal(l_i, approx=True)            # (T, hd) fp32
        # fused output projection: accumulate ctx_h @ Wo[hh] into (T, H)
        attn_acc = attn_acc + jnp.dot(ctx_h.astype(jnp.bfloat16), wo3_ref[hh],
                                      preferred_element_type=jnp.float32)

    x2 = x + attn_acc + bo_ref[...]                              # residual 1 (fp32)

    # ---- LN2 + MLP (gelu_new), bf16 MXU operands / fp32 accumulation ----
    h2 = _layer_norm(x2, ln2g_ref[...], ln2b_ref[...])
    ff = jnp.dot(h2.astype(jnp.bfloat16), wfc_ref[...],
                 preferred_element_type=jnp.float32) + bfc_ref[...]
    ff = _gelu_new(ff)
    ff = jnp.dot(ff.astype(jnp.bfloat16), wproj_ref[...],
                 preferred_element_type=jnp.float32) + bproj_ref[...]

    out_ref[0] = x2 + ff                                         # residual 2


def run_block(hidden, addmask3, layer_params, num_heads, kv_chunk):
    B, T, H = hidden.shape
    kernel = functools.partial(gptneo_block_kernel, num_heads, kv_chunk)

    def full(a):
        nd = a.ndim
        return pl.BlockSpec(a.shape, lambda b, _nd=nd: (0,) * _nd)

    in_specs = [
        pl.BlockSpec((1, T, H), lambda b: (b, 0, 0)),    # x, one batch row
        pl.BlockSpec((1, 1, T), lambda b: (b, 0, 0)),    # additive pad mask
    ] + [full(p) for p in layer_params]

    return pl.pallas_call(
        kernel,
        out_shape=jax.ShapeDtypeStruct((B, T, H), jnp.float32),
        grid_spec=pltpu.PrefetchScalarGridSpec(
            num_scalar_prefetch=0,
            grid=(B,),
            in_specs=in_specs,
            out_specs=pl.BlockSpec((1, T, H), lambda b: (b, 0, 0)),
        ),
        compiler_params=pltpu.CompilerParams(
            dimension_semantics=("parallel",),
            vmem_limit_bytes=_vmem_limit_bytes()),
    )(hidden, addmask3, *layer_params)


# ---------------------------------------------------------------------------
# Final LayerNorm (row-tiled) + lm_head matmul tiled over (rows, vocab).
# ---------------------------------------------------------------------------
def ln_f_kernel(x_ref, g_ref, b_ref, o_ref):
    o_ref[...] = _layer_norm(x_ref[...], g_ref[...], b_ref[...]).astype(o_ref.dtype)


def lm_head_kernel(x_ref, w_ref, o_ref):
    o_ref[...] = jnp.dot(x_ref[...], w_ref[...], preferred_element_type=jnp.float32)


def run_lm_head(hidden, ln_g, ln_b, w_lm_pad, vocab_size):
    B, T, H = hidden.shape
    N = B * T
    x2d = hidden.reshape(N, H)
    tile_n = _pick_tile(N)

    # Final LayerNorm, row-tiled; emitted in bf16 so lm_head reads bf16 MXU operands.
    # (HF keeps this fp32 -> tiny logit-level numeric drift.)
    x_ln = pl.pallas_call(
        ln_f_kernel,
        out_shape=jax.ShapeDtypeStruct((N, H), jnp.bfloat16),
        grid_spec=pltpu.PrefetchScalarGridSpec(
            num_scalar_prefetch=0,
            grid=(N // tile_n,),
            in_specs=[pl.BlockSpec((tile_n, H), lambda i: (i, 0)),
                      pl.BlockSpec((1, H), lambda i: (0, 0)),
                      pl.BlockSpec((1, H), lambda i: (0, 0))],
            out_specs=pl.BlockSpec((tile_n, H), lambda i: (i, 0)),
        ),
        compiler_params=pltpu.CompilerParams(
            dimension_semantics=("parallel",),
            vmem_limit_bytes=_vmem_limit_bytes()),
    )(x2d, ln_g, ln_b)

    Vpad = w_lm_pad.shape[1]                 # weight was padded once at init
    tile_v = _pick_tile(Vpad)
    logits = pl.pallas_call(
        lm_head_kernel,
        out_shape=jax.ShapeDtypeStruct((N, Vpad), jnp.float32),
        grid_spec=pltpu.PrefetchScalarGridSpec(
            num_scalar_prefetch=0,
            grid=(N // tile_n, Vpad // tile_v),
            in_specs=[pl.BlockSpec((tile_n, H), lambda i, j: (i, 0)),
                      pl.BlockSpec((H, tile_v), lambda i, j: (0, j))],
            out_specs=pl.BlockSpec((tile_n, tile_v), lambda i, j: (i, j)),
        ),
        compiler_params=pltpu.CompilerParams(
            dimension_semantics=("parallel", "parallel"),
            vmem_limit_bytes=_vmem_limit_bytes()),
    )(x_ln, w_lm_pad)

    if Vpad != vocab_size:
        logits = logits[:, :vocab_size]
    return logits.reshape(B, T, vocab_size)


# ---------------------------------------------------------------------------
# Parameter construction + full forward
# ---------------------------------------------------------------------------
def init_params(key, vocab, max_pos, H, inter, num_layers, num_heads):
    hd = H // num_heads

    def nrm(k, shape, scale=0.02, dtype=jnp.bfloat16):
        # weights stored pre-transposed (in_features, out_features), bf16 for MXU
        return (scale * jax.random.normal(k, shape)).astype(dtype)

    keys = jax.random.split(key, 2 + num_layers + 1)
    p = {"vocab_size": vocab}
    p["wte"] = nrm(keys[0], (vocab, H), dtype=jnp.float32)
    p["wpe"] = nrm(keys[1], (max_pos, H), dtype=jnp.float32)
    p["blocks"] = []
    for l in range(num_layers):
        kq, ko, kf, kp = jax.random.split(keys[2 + l], 4)
        blk = (
            jnp.ones((1, H), jnp.float32),                 # ln1 gamma
            jnp.zeros((1, H), jnp.float32),                # ln1 beta
            nrm(kq, (H, 3 * H)),                           # fused Wqkv (in, 3*out)
            nrm(ko, (H, H)).reshape(num_heads, hd, H),     # W_out_proj, per-head slices
            jnp.zeros((1, H), jnp.float32),                # out_proj bias
            jnp.ones((1, H), jnp.float32),                 # ln2 gamma
            jnp.zeros((1, H), jnp.float32),                # ln2 beta
            nrm(kf, (H, inter)),                           # W_c_fc
            jnp.zeros((1, inter), jnp.float32),            # c_fc bias
            nrm(kp, (inter, H)),                           # W_c_proj
            jnp.zeros((1, H), jnp.float32),                # c_proj bias
        )
        p["blocks"].append(blk)
    p["ln_f_g"] = jnp.ones((1, H), jnp.float32)
    p["ln_f_b"] = jnp.zeros((1, H), jnp.float32)
    # lm_head weight (H, V) bf16, padded ONCE to a lane-aligned vocab so the forward
    # pass never re-pads the weight per call.
    # TODO(synk): HF ties lm_head to wte; kept independent to match the provided module.
    w_lm = nrm(keys[-1], (H, vocab))
    vpad = pl.cdiv(vocab, 128) * 128
    if vpad != vocab:
        w_lm = jnp.pad(w_lm, ((0, 0), (0, vpad - vocab)))
    p["w_lm_pad"] = w_lm
    return p


def gptneo_forward(params, input_ids, attention_mask, num_heads, kv_chunk=512):
    B, T = input_ids.shape
    if attention_mask is None:
        attention_mask = jnp.ones((B, T), jnp.int32)
    mask_i = attention_mask.astype(jnp.int32)
    # position_ids per the torch reference: cumsum(mask)-1, masked positions -> 1
    position_ids = jnp.cumsum(mask_i, axis=-1) - 1
    position_ids = jnp.where(mask_i == 0, 1, position_ids)

    # embedding gathers kept as plain-JAX glue (no clean static BlockSpec form)
    inputs_embeds = jnp.take(params["wte"], input_ids, axis=0)        # (B, T, H)
    position_embeds = jnp.take(params["wpe"], position_ids, axis=0)   # (B, T, H)
    hidden = (inputs_embeds + position_embeds).astype(jnp.float32)

    # additive key-padding mask: 0 where attended, -1e9 where masked out
    addmask3 = ((1.0 - attention_mask.astype(jnp.float32)) * NEG_INF
                ).reshape(B, 1, T).astype(jnp.float32)

    kv_chunk = min(kv_chunk, T)
    for blk in params["blocks"]:
        hidden = run_block(hidden, addmask3, blk, num_heads, kv_chunk)

    return run_lm_head(hidden, params["ln_f_g"], params["ln_f_b"],
                       params["w_lm_pad"], params["vocab_size"])


if __name__ == "__main__":
    # small config consistent with the module
    VOCAB = 256
    MAX_POS = 64
    HIDDEN = 32
    NUM_HEADS = 2
    NUM_LAYERS = 2
    INTER = 4 * HIDDEN
    B, T = 2, 8

    root = jax.random.PRNGKey(0)
    k_param, k_ids = jax.random.split(root)
    params = init_params(k_param, VOCAB, MAX_POS, HIDDEN, INTER, NUM_LAYERS, NUM_HEADS)

    input_ids = jax.random.randint(k_ids, (B, T), 0, VOCAB, dtype=jnp.int32)
    attention_mask = jnp.ones((B, T), jnp.int32).at[1, 6:].set(0)  # exercise masking

    logits = gptneo_forward(params, input_ids, attention_mask, NUM_HEADS)
    jax.block_until_ready(logits)
    assert logits.shape == (B, T, VOCAB) and logits.dtype == jnp.float32
    print("KERNEL_OK")
</pallas_src>

<mosaic_0001>
module attributes {stable_mosaic.version = 11 : i64} {
  func.func @gptneo_block_kernel(%arg0: i32, %arg1: memref<1x8x32xf32, #tpu.memory_space<vmem>>, %arg2: memref<1x1x8xf32, #tpu.memory_space<vmem>>, %arg3: memref<1x32xf32, #tpu.memory_space<vmem>>, %arg4: memref<1x32xf32, #tpu.memory_space<vmem>>, %arg5: memref<32x96xbf16, #tpu.memory_space<vmem>>, %arg6: memref<2x16x32xbf16, #tpu.memory_space<vmem>>, %arg7: memref<1x32xf32, #tpu.memory_space<vmem>>, %arg8: memref<1x32xf32, #tpu.memory_space<vmem>>, %arg9: memref<1x32xf32, #tpu.memory_space<vmem>>, %arg10: memref<32x128xbf16, #tpu.memory_space<vmem>>, %arg11: memref<1x128xf32, #tpu.memory_space<vmem>>, %arg12: memref<128x32xbf16, #tpu.memory_space<vmem>>, %arg13: memref<1x32xf32, #tpu.memory_space<vmem>>, %arg14: memref<1x8x32xf32, #tpu.memory_space<vmem>>) attributes {dimension_semantics = [#tpu.dimension_semantics<parallel>], iteration_bounds = array<i64: 2>, scalar_prefetch = 0 : i64, scratch_operands = 0 : i64, tpu.core_type = #tpu.core_type<tc>, window_params = [{transform_indices = @transform_0, window_bounds = array<i64: 1, 8, 32>}, {transform_indices = @transform_1, window_bounds = array<i64: 1, 1, 8>}, {pipeline_mode = #tpu.pipeline_mode<synchronous>, transform_indices = @transform_2, window_bounds = array<i64: 1, 32>}, {pipeline_mode = #tpu.pipeline_mode<synchronous>, transform_indices = @transform_3, window_bounds = array<i64: 1, 32>}, {pipeline_mode = #tpu.pipeline_mode<synchronous>, transform_indices = @transform_4, window_bounds = array<i64: 32, 96>}, {pipeline_mode = #tpu.pipeline_mode<synchronous>, transform_indices = @transform_5, window_bounds = array<i64: 2, 16, 32>}, {pipeline_mode = #tpu.pipeline_mode<synchronous>, transform_indices = @transform_6, window_bounds = array<i64: 1, 32>}, {pipeline_mode = #tpu.pipeline_mode<synchronous>, transform_indices = @transform_7, window_bounds = array<i64: 1, 32>}, {pipeline_mode = #tpu.pipeline_mode<synchronous>, transform_indices = @transform_8, window_bounds = array<i64: 1, 32>}, {pipeline_mode = #tpu.pipeline_mode<synchronous>, transform_indices = @transform_9, window_bounds = array<i64: 32, 128>}, {pipeline_mode = #tpu.pipeline_mode<synchronous>, transform_indices = @transform_10, window_bounds = array<i64: 1, 128>}, {pipeline_mode = #tpu.pipeline_mode<synchronous>, transform_indices = @transform_11, window_bounds = array<i64: 128, 32>}, {pipeline_mode = #tpu.pipeline_mode<synchronous>, transform_indices = @transform_12, window_bounds = array<i64: 1, 32>}, {transform_indices = @transform_13, window_bounds = array<i64: 1, 8, 32>}]} {
    %c0 = arith.constant 0 : index
    %c0_0 = arith.constant 0 : index
    %c0_1 = arith.constant 0 : index
    %0 = vector.load %arg1[%c0, %c0_0, %c0_1] : memref<1x8x32xf32, #tpu.memory_space<vmem>>, vector<1x8x32xf32>
    %1 = vector.shape_cast %0 : vector<1x8x32xf32> to vector<8x32xf32>
    %c0_2 = arith.constant 0 : index
    %c0_3 = arith.constant 0 : index
    %2 = vector.load %arg3[%c0_2, %c0_3] : memref<1x32xf32, #tpu.memory_space<vmem>>, vector<1x32xf32>
    %c0_4 = arith.constant 0 : index
    %c0_5 = arith.constant 0 : index
    %3 = vector.load %arg4[%c0_4, %c0_5] : memref<1x32xf32, #tpu.memory_space<vmem>>, vector<1x32xf32>
    %cst = arith.constant dense<0.000000e+00> : vector<8xf32>
    %4 = vector.multi_reduction <add>, %1, %cst [1] : vector<8x32xf32> to vector<8xf32>
    %5 = vector.shape_cast %4 : vector<8xf32> to vector<8x1xf32>
    %cst_6 = arith.constant 3.200000e+01 : f32
    %6 = vector.broadcast %cst_6 : f32 to vector<8x1xf32>
    %7 = arith.divf %5, %6 : vector<8x1xf32>
    %8 = vector.broadcast %7 : vector<8x1xf32> to vector<8x32xf32>
    %9 = arith.subf %1, %8 : vector<8x32xf32>
    %10 = arith.mulf %9, %9 : vector<8x32xf32>
    %cst_7 = arith.constant dense<0.000000e+00> : vector<8xf32>
    %11 = vector.multi_reduction <add>, %10, %cst_7 [1] : vector<8x32xf32> to vector<8xf32>
    %12 = vector.shape_cast %11 : vector<8xf32> to vector<8x1xf32>
    %cst_8 = arith.constant 3.200000e+01 : f32
    %13 = vector.broadcast %cst_8 : f32 to vector<8x1xf32>
    %14 = arith.divf %12, %13 : vector<8x1xf32>
    %15 = vector.broadcast %7 : vector<8x1xf32> to vector<8x32xf32>
    %16 = arith.subf %1, %15 : vector<8x32xf32>
    %cst_9 = arith.constant 9.99999974E-6 : f32
    %17 = vector.broadcast %cst_9 : f32 to vector<8x1xf32>
    %18 = arith.addf %14, %17 : vector<8x1xf32>
    %19 = math.rsqrt %18 : vector<8x1xf32>
    %20 = vector.broadcast %19 : vector<8x1xf32> to vector<8x32xf32>
    %21 = arith.mulf %16, %20 : vector<8x32xf32>
    %22 = vector.broadcast %2 : vector<1x32xf32> to vector<8x32xf32>
    %23 = arith.mulf %21, %22 : vector<8x32xf32>
    %24 = vector.broadcast %3 : vector<1x32xf32> to vector<8x32xf32>
    %25 = arith.addf %23, %24 : vector<8x32xf32>
    %26 = arith.truncf %25 : vector<8x32xf32> to vector<8x32xbf16>
    %c0_10 = arith.constant 0 : index
    %c0_11 = arith.constant 0 : index
    %27 = vector.load %arg5[%c0_10, %c0_11] : memref<32x96xbf16, #tpu.memory_space<vmem>>, vector<32x96xbf16>
    %cst_12 = arith.constant dense<0.000000e+00> : vector<8x96xf32>
    %28 = tpu.matmul %26, %27, %cst_12 {dimension_numbers = #tpu.dot_dimension_numbers<[1], [0], [0], [1], [0, 0, 1, 1], [], []>} : vector<8x32xbf16>, vector<32x96xbf16>, vector<8x96xf32> -> vector<8x96xf32>
    %c0_13 = arith.constant 0 : index
    %c0_14 = arith.constant 0 : index
    %c0_15 = arith.constant 0 : index
    %29 = vector.load %arg2[%c0_13, %c0_14, %c0_15] : memref<1x1x8xf32, #tpu.memory_space<vmem>>, vector<1x1x8xf32>
    %30 = vector.shape_cast %29 : vector<1x1x8xf32> to vector<1x8xf32>
    %31 = tpu.iota {dimensions = array<i32: 0>} : vector<8x8xi32>
    %32 = tpu.iota {dimensions = array<i32: 1>} : vector<8x8xi32>
    %c0_i32 = arith.constant 0 : i32
    %33 = vector.broadcast %c0_i32 : i32 to vector<8x8xi32>
    %34 = arith.addi %32, %33 : vector<8x8xi32>
    %35 = arith.cmpi sge, %31, %34 : vector<8x8xi32>
    %cst_16 = arith.constant -1.000000e+09 : f32
    %36 = vector.shape_cast %30 : vector<1x8xf32> to vector<1x8xf32>
    %37 = vector.broadcast %36 : vector<1x8xf32> to vector<8x8xf32>
    %38 = vector.broadcast %cst_16 : f32 to vector<8x8xf32>
    %39 = arith.select %35, %37, %38 : vector<8x8xi1>, vector<8x8xf32>
    %cst_17 = arith.constant 0.000000e+00 : f32
    %40 = vector.broadcast %cst_17 : f32 to vector<8x32xf32>
    %41 = vector.extract_strided_slice %28 {offsets = [0, 0], sizes = [8, 16], strides = [1, 1]} : vector<8x96xf32> to vector<8x16xf32>
    %42 = vector.extract_strided_slice %28 {offsets = [0, 32], sizes = [8, 16], strides = [1, 1]} : vector<8x96xf32> to vector<8x16xf32>
    %43 = vector.extract_strided_slice %28 {offsets = [0, 64], sizes = [8, 16], strides = [1, 1]} : vector<8x96xf32> to vector<8x16xf32>
    %44 = arith.truncf %43 : vector<8x16xf32> to vector<8x16xbf16>
    %cst_18 = arith.constant 0xFF800000 : f32
    %45 = vector.broadcast %cst_18 : f32 to vector<8x1xf32>
    %cst_19 = arith.constant 0.000000e+00 : f32
    %46 = vector.broadcast %cst_19 : f32 to vector<8x1xf32>
    %cst_20 = arith.constant 0.000000e+00 : f32
    %47 = vector.broadcast %cst_20 : f32 to vector<8x16xf32>
    %cst_21 = arith.constant dense<0.000000e+00> : vector<8x8xf32>
    %48 = tpu.matmul %41, %42, %cst_21 {dimension_numbers = #tpu.dot_dimension_numbers<[1], [1], [0], [0], [0, 0, 1, 0], [], []>} : vector<8x16xf32>, vector<8x16xf32>, vector<8x8xf32> -> vector<8x8xf32>
    %49 = arith.addf %48, %39 : vector<8x8xf32>
    %cst_22 = arith.constant dense<0xFF800000> : vector<8xf32>
    %50 = vector.multi_reduction <maximumf>, %49, %cst_22 [1] : vector<8x8xf32> to vector<8xf32>
    %51 = vector.shape_cast %50 : vector<8xf32> to vector<8x1xf32>
    %52 = arith.maximumf %45, %51 : vector<8x1xf32>
    %53 = arith.subf %45, %52 : vector<8x1xf32>
    %54 = math.exp %53 : vector<8x1xf32>
    %55 = vector.broadcast %52 : vector<8x1xf32> to vector<8x8xf32>
    %56 = arith.subf %49, %55 : vector<8x8xf32>
    %57 = math.exp %56 : vector<8x8xf32>
    %58 = arith.mulf %54, %46 : vector<8x1xf32>
    %cst_23 = arith.constant dense<0.000000e+00> : vector<8xf32>
    %59 = vector.multi_reduction <add>, %57, %cst_23 [1] : vector<8x8xf32> to vector<8xf32>
    %60 = vector.shape_cast %59 : vector<8xf32> to vector<8x1xf32>
    %61 = arith.addf %58, %60 : vector<8x1xf32>
    %62 = vector.broadcast %54 : vector<8x1xf32> to vector<8x16xf32>
    %63 = arith.mulf %62, %47 : vector<8x16xf32>
    %64 = arith.truncf %57 : vector<8x8xf32> to vector<8x8xbf16>
    %cst_24 = arith.constant dense<0.000000e+00> : vector<8x16xf32>
    %65 = tpu.matmul %64, %44, %cst_24 {dimension_numbers = #tpu.dot_dimension_numbers<[1], [0], [0], [1], [0, 0, 1, 1], [], []>} : vector<8x8xbf16>, vector<8x16xbf16>, vector<8x16xf32> -> vector<8x16xf32>
    %66 = arith.addf %63, %65 : vector<8x16xf32>
    %67 = tpu.reciprocal %61 {approx = true} : vector<8x1xf32> -> vector<8x1xf32>
    %68 = vector.broadcast %67 : vector<8x1xf32> to vector<8x16xf32>
    %69 = arith.mulf %66, %68 : vector<8x16xf32>
    %70 = arith.truncf %69 : vector<8x16xf32> to vector<8x16xbf16>
    %c0_25 = arith.constant 0 : index
    %c0_26 = arith.constant 0 : index
    %c0_27 = arith.constant 0 : index
    %71 = vector.load %arg6[%c0_25, %c0_26, %c0_27] : memref<2x16x32xbf16, #tpu.memory_space<vmem>>, vector<1x16x32xbf16>
    %72 = vector.shape_cast %71 : vector<1x16x32xbf16> to vector<16x32xbf16>
    %cst_28 = arith.constant dense<0.000000e+00> : vector<8x32xf32>
    %73 = tpu.matmul %70, %72, %cst_28 {dimension_numbers = #tpu.dot_dimension_numbers<[1], [0], [0], [1], [0, 0, 1, 1], [], []>} : vector<8x16xbf16>, vector<16x32xbf16>, vector<8x32xf32> -> vector<8x32xf32>
    %74 = arith.addf %40, %73 : vector<8x32xf32>
    %75 = vector.extract_strided_slice %28 {offsets = [0, 16], sizes = [8, 16], strides = [1, 1]} : vector<8x96xf32> to vector<8x16xf32>
    %76 = vector.extract_strided_slice %28 {offsets = [0, 48], sizes = [8, 16], strides = [1, 1]} : vector<8x96xf32> to vector<8x16xf32>
    %77 = vector.extract_strided_slice %28 {offsets = [0, 80], sizes = [8, 16], strides = [1, 1]} : vector<8x96xf32> to vector<8x16xf32>
    %78 = arith.truncf %77 : vector<8x16xf32> to vector<8x16xbf16>
    %cst_29 = arith.constant 0xFF800000 : f32
    %79 = vector.broadcast %cst_29 : f32 to vector<8x1xf32>
    %cst_30 = arith.constant 0.000000e+00 : f32
    %80 = vector.broadcast %cst_30 : f32 to vector<8x1xf32>
    %cst_31 = arith.constant 0.000000e+00 : f32
    %81 = vector.broadcast %cst_31 : f32 to vector<8x16xf32>
    %cst_32 = arith.constant dense<0.000000e+00> : vector<8x8xf32>
    %82 = tpu.matmul %75, %76, %cst_32 {dimension_numbers = #tpu.dot_dimension_numbers<[1], [1], [0], [0], [0, 0, 1, 0], [], []>} : vector<8x16xf32>, vector<8x16xf32>, vector<8x8xf32> -> vector<8x8xf32>
    %83 = arith.addf %82, %39 : vector<8x8xf32>
    %cst_33 = arith.constant dense<0xFF800000> : vector<8xf32>
    %84 = vector.multi_reduction <maximumf>, %83, %cst_33 [1] : vector<8x8xf32> to vector<8xf32>
    %85 = vector.shape_cast %84 : vector<8xf32> to vector<8x1xf32>
    %86 = arith.maximumf %79, %85 : vector<8x1xf32>
    %87 = arith.subf %79, %86 : vector<8x1xf32>
    %88 = math.exp %87 : vector<8x1xf32>
    %89 = vector.broadcast %86 : vector<8x1xf32> to vector<8x8xf32>
    %90 = arith.subf %83, %89 : vector<8x8xf32>
    %91 = math.exp %90 : vector<8x8xf32>
    %92 = arith.mulf %88, %80 : vector<8x1xf32>
    %cst_34 = arith.constant dense<0.000000e+00> : vector<8xf32>
    %93 = vector.multi_reduction <add>, %91, %cst_34 [1] : vector<8x8xf32> to vector<8xf32>
    %94 = vector.shape_cast %93 : vector<8xf32> to vector<8x1xf32>
    %95 = arith.addf %92, %94 : vector<8x1xf32>
    %96 = vector.broadcast %88 : vector<8x1xf32> to vector<8x16xf32>
    %97 = arith.mulf %96, %81 : vector<8x16xf32>
    %98 = arith.truncf %91 : vector<8x8xf32> to vector<8x8xbf16>
    %cst_35 = arith.constant dense<0.000000e+00> : vector<8x16xf32>
    %99 = tpu.matmul %98, %78, %cst_35 {dimension_numbers = #tpu.dot_dimension_numbers<[1], [0], [0], [1], [0, 0, 1, 1], [], []>} : vector<8x8xbf16>, vector<8x16xbf16>, vector<8x16xf32> -> vector<8x16xf32>
    %100 = arith.addf %97, %99 : vector<8x16xf32>
    %101 = tpu.reciprocal %95 {approx = true} : vector<8x1xf32> -> vector<8x1xf32>
    %102 = vector.broadcast %101 : vector<8x1xf32> to vector<8x16xf32>
    %103 = arith.mulf %100, %102 : vector<8x16xf32>
    %104 = arith.truncf %103 : vector<8x16xf32> to vector<8x16xbf16>
    %c1 = arith.constant 1 : index
    %c0_36 = arith.constant 0 : index
    %c0_37 = arith.constant 0 : index
    %105 = vector.load %arg6[%c1, %c0_36, %c0_37] : memref<2x16x32xbf16, #tpu.memory_space<vmem>>, vector<1x16x32xbf16>
    %106 = vector.shape_cast %105 : vector<1x16x32xbf16> to vector<16x32xbf16>
    %cst_38 = arith.constant dense<0.000000e+00> : vector<8x32xf32>
    %107 = tpu.matmul %104, %106, %cst_38 {dimension_numbers = #tpu.dot_dimension_numbers<[1], [0], [0], [1], [0, 0, 1, 1], [], []>} : vector<8x16xbf16>, vector<16x32xbf16>, vector<8x32xf32> -> vector<8x32xf32>
    %108 = arith.addf %74, %107 : vector<8x32xf32>
    %109 = arith.addf %1, %108 : vector<8x32xf32>
    %c0_39 = arith.constant 0 : index
    %c0_40 = arith.constant 0 : index
    %110 = vector.load %arg7[%c0_39, %c0_40] : memref<1x32xf32, #tpu.memory_space<vmem>>, vector<1x32xf32>
    %111 = vector.broadcast %110 : vector<1x32xf32> to vector<8x32xf32>
    %112 = arith.addf %109, %111 : vector<8x32xf32>
    %c0_41 = arith.constant 0 : index
    %c0_42 = arith.constant 0 : index
    %113 = vector.load %arg8[%c0_41, %c0_42] : memref<1x32xf32, #tpu.memory_space<vmem>>, vector<1x32xf32>
    %c0_43 = arith.constant 0 : index
    %c0_44 = arith.constant 0 : index
    %114 = vector.load %arg9[%c0_43, %c0_44] : memref<1x32xf32, #tpu.memory_space<vmem>>, vector<1x32xf32>
    %cst_45 = arith.constant dense<0.000000e+00> : vector<8xf32>
    %115 = vector.multi_reduction <add>, %112, %cst_45 [1] : vector<8x32xf32> to vector<8xf32>
    %116 = vector.shape_cast %115 : vector<8xf32> to vector<8x1xf32>
    %cst_46 = arith.constant 3.200000e+01 : f32
    %117 = vector.broadcast %cst_46 : f32 to vector<8x1xf32>
    %118 = arith.divf %116, %117 : vector<8x1xf32>
    %119 = vector.broadcast %118 : vector<8x1xf32> to vector<8x32xf32>
    %120 = arith.subf %112, %119 : vector<8x32xf32>
    %121 = arith.mulf %120, %120 : vector<8x32xf32>
    %cst_47 = arith.constant dense<0.000000e+00> : vector<8xf32>
    %122 = vector.multi_reduction <add>, %121, %cst_47 [1] : vector<8x32xf32> to vector<8xf32>
    %123 = vector.shape_cast %122 : vector<8xf32> to vector<8x1xf32>
    %cst_48 = arith.constant 3.200000e+01 : f32
    %124 = vector.broadcast %cst_48 : f32 to vector<8x1xf32>
    %125 = arith.divf %123, %124 : vector<8x1xf32>
    %126 = vector.broadcast %118 : vector<8x1xf32> to vector<8x32xf32>
    %127 = arith.subf %112, %126 : vector<8x32xf32>
    %cst_49 = arith.constant 9.99999974E-6 : f32
    %128 = vector.broadcast %cst_49 : f32 to vector<8x1xf32>
    %129 = arith.addf %125, %128 : vector<8x1xf32>
    %130 = math.rsqrt %129 : vector<8x1xf32>
    %131 = vector.broadcast %130 : vector<8x1xf32> to vector<8x32xf32>
    %132 = arith.mulf %127, %131 : vector<8x32xf32>
    %133 = vector.broadcast %113 : vector<1x32xf32> to vector<8x32xf32>
    %134 = arith.mulf %132, %133 : vector<8x32xf32>
    %135 = vector.broadcast %114 : vector<1x32xf32> to vector<8x32xf32>
    %136 = arith.addf %134, %135 : vector<8x32xf32>
    %137 = arith.truncf %136 : vector<8x32xf32> to vector<8x32xbf16>
    %c0_50 = arith.constant 0 : index
    %c0_51 = arith.constant 0 : index
    %138 = vector.load %arg10[%c0_50, %c0_51] : memref<32x128xbf16, #tpu.memory_space<vmem>>, vector<32x128xbf16>
    %cst_52 = arith.constant dense<0.000000e+00> : vector<8x128xf32>
    %139 = tpu.matmul %137, %138, %cst_52 {dimension_numbers = #tpu.dot_dimension_numbers<[1], [0], [0], [1], [0, 0, 1, 1], [], []>} : vector<8x32xbf16>, vector<32x128xbf16>, vector<8x128xf32> -> vector<8x128xf32>
    %c0_53 = arith.constant 0 : index
    %c0_54 = arith.constant 0 : index
    %140 = vector.load %arg11[%c0_53, %c0_54] : memref<1x128xf32, #tpu.memory_space<vmem>>, vector<1x128xf32>
    %141 = vector.broadcast %140 : vector<1x128xf32> to vector<8x128xf32>
    %142 = arith.addf %139, %141 : vector<8x128xf32>
    %cst_55 = arith.constant 5.000000e-01 : f32
    %143 = vector.broadcast %cst_55 : f32 to vector<8x128xf32>
    %144 = arith.mulf %143, %142 : vector<8x128xf32>
    %cst_56 = arith.constant 4.471500e-02 : f32
    %145 = vector.broadcast %cst_56 : f32 to vector<8x128xf32>
    %146 = arith.mulf %145, %142 : vector<8x128xf32>
    %147 = arith.mulf %146, %142 : vector<8x128xf32>
    %148 = arith.mulf %147, %142 : vector<8x128xf32>
    %149 = arith.addf %142, %148 : vector<8x128xf32>
    %cst_57 = arith.constant 0.797884583 : f32
    %150 = vector.broadcast %cst_57 : f32 to vector<8x128xf32>
    %151 = arith.mulf %150, %149 : vector<8x128xf32>
    %152 = math.tanh %151 : vector<8x128xf32>
    %cst_58 = arith.constant 1.000000e+00 : f32
    %153 = vector.broadcast %cst_58 : f32 to vector<8x128xf32>
    %154 = arith.addf %153, %152 : vector<8x128xf32>
    %155 = arith.mulf %144, %154 : vector<8x128xf32>
    %156 = arith.truncf %155 : vector<8x128xf32> to vector<8x128xbf16>
    %c0_59 = arith.constant 0 : index
    %c0_60 = arith.constant 0 : index
    %157 = vector.load %arg12[%c0_59, %c0_60] : memref<128x32xbf16, #tpu.memory_space<vmem>>, vector<128x32xbf16>
    %cst_61 = arith.constant dense<0.000000e+00> : vector<8x32xf32>
    %158 = tpu.matmul %156, %157, %cst_61 {dimension_numbers = #tpu.dot_dimension_numbers<[1], [0], [0], [1], [0, 0, 1, 1], [], []>} : vector<8x128xbf16>, vector<128x32xbf16>, vector<8x32xf32> -> vector<8x32xf32>
    %c0_62 = arith.constant 0 : index
    %c0_63 = arith.constant 0 : index
    %159 = vector.load %arg13[%c0_62, %c0_63] : memref<1x32xf32, #tpu.memory_space<vmem>>, vector<1x32xf32>
    %160 = vector.broadcast %159 : vector<1x32xf32> to vector<8x32xf32>
    %161 = arith.addf %158, %160 : vector<8x32xf32>
    %162 = arith.addf %112, %161 : vector<8x32xf32>
    %c0_64 = arith.constant 0 : index
    %c0_65 = arith.constant 0 : index
    %c0_66 = arith.constant 0 : index
    %163 = vector.load %arg14[%c0_64, %c0_65, %c0_66] : memref<1x8x32xf32, #tpu.memory_space<vmem>>, vector<1x8x32xf32>
    %164 = vector.shape_cast %163 : vector<1x8x32xf32> to vector<8x32xf32>
    %165 = vector.shape_cast %162 : vector<8x32xf32> to vector<1x8x32xf32>
    tpu.vector_store %arg14[%c0_64, %c0_65, %c0_66], %165 {strides = array<i32>} : memref<1x8x32xf32, #tpu.memory_space<vmem>>, vector<1x8x32xf32>,
    return
  }
  func.func @transform_0(%arg0: i32) -> (i32, i32, i32) {
    %c0_i32 = arith.constant 0 : i32
    %c0_i32_0 = arith.constant 0 : i32
    %c0_i32_1 = arith.constant 0 : i32
    return %arg0, %c0_i32, %c0_i32_0 : i32, i32, i32
  }
  func.func @transform_1(%arg0: i32) -> (i32, i32, i32) {
    %c0_i32 = arith.constant 0 : i32
    %c0_i32_0 = arith.constant 0 : i32
    %c0_i32_1 = arith.constant 0 : i32
    return %arg0, %c0_i32, %c0_i32_0 : i32, i32, i32
  }
  func.func @transform_2(%arg0: i32) -> (i32, i32) {
    %c0_i32 = arith.constant 0 : i32
    %c0_i32_0 = arith.constant 0 : i32
    %c0_i32_1 = arith.constant 0 : i32
    return %c0_i32, %c0_i32_0 : i32, i32
  }
  func.func @transform_3(%arg0: i32) -> (i32, i32) {
    %c0_i32 = arith.constant 0 : i32
    %c0_i32_0 = arith.constant 0 : i32
    %c0_i32_1 = arith.constant 0 : i32
    return %c0_i32, %c0_i32_0 : i32, i32
  }
  func.func @transform_4(%arg0: i32) -> (i32, i32) {
    %c0_i32 = arith.constant 0 : i32
    %c0_i32_0 = arith.constant 0 : i32
    %c0_i32_1 = arith.constant 0 : i32
    return %c0_i32, %c0_i32_0 : i32, i32
  }
  func.func @transform_5(%arg0: i32) -> (i32, i32, i32) {
    %c0_i32 = arith.constant 0 : i32
    %c0_i32_0 = arith.constant 0 : i32
    %c0_i32_1 = arith.constant 0 : i32
    %c0_i32_2 = arith.constant 0 : i32
    return %c0_i32, %c0_i32_0, %c0_i32_1 : i32, i32, i32
  }
  func.func @transform_6(%arg0: i32) -> (i32, i32) {
    %c0_i32 = arith.constant 0 : i32
    %c0_i32_0 = arith.constant 0 : i32
    %c0_i32_1 = arith.constant 0 : i32
    return %c0_i32, %c0_i32_0 : i32, i32
  }
  func.func @transform_7(%arg0: i32) -> (i32, i32) {
    %c0_i32 = arith.constant 0 : i32
    %c0_i32_0 = arith.constant 0 : i32
    %c0_i32_1 = arith.constant 0 : i32
    return %c0_i32, %c0_i32_0 : i32, i32
  }
  func.func @transform_8(%arg0: i32) -> (i32, i32) {
    %c0_i32 = arith.constant 0 : i32
    %c0_i32_0 = arith.constant 0 : i32
    %c0_i32_1 = arith.constant 0 : i32
    return %c0_i32, %c0_i32_0 : i32, i32
  }
  func.func @transform_9(%arg0: i32) -> (i32, i32) {
    %c0_i32 = arith.constant 0 : i32
    %c0_i32_0 = arith.constant 0 : i32
    %c0_i32_1 = arith.constant 0 : i32
    return %c0_i32, %c0_i32_0 : i32, i32
  }
  func.func @transform_10(%arg0: i32) -> (i32, i32) {
    %c0_i32 = arith.constant 0 : i32
    %c0_i32_0 = arith.constant 0 : i32
    %c0_i32_1 = arith.constant 0 : i32
    return %c0_i32, %c0_i32_0 : i32, i32
  }
  func.func @transform_11(%arg0: i32) -> (i32, i32) {
    %c0_i32 = arith.constant 0 : i32
    %c0_i32_0 = arith.constant 0 : i32
    %c0_i32_1 = arith.constant 0 : i32
    return %c0_i32, %c0_i32_0 : i32, i32
  }
  func.func @transform_12(%arg0: i32) -> (i32, i32) {
    %c0_i32 = arith.constant 0 : i32
    %c0_i32_0 = arith.constant 0 : i32
    %c0_i32_1 = arith.constant 0 : i32
    return %c0_i32, %c0_i32_0 : i32, i32
  }
  func.func @transform_13(%arg0: i32) -> (i32, i32, i32) {
    %c0_i32 = arith.constant 0 : i32
    %c0_i32_0 = arith.constant 0 : i32
    %c0_i32_1 = arith.constant 0 : i32
    return %arg0, %c0_i32, %c0_i32_0 : i32, i32, i32
  }
}

</mosaic_0001>

<bundles_post_ra>
// kernel: tpu_custom_call.1
= control target key start
LH: loop header
LB: loop body
LE: loop exit
PB: predicated region body
PF: predicated region fallthrough
CT: control target
= control target key end

     0   :  { %s1861_s0 = inlined_call_operand.vmem [shape: f32[2,8,32], index: 0, kind: input, shape index: {}]   ;;  %s1862_s1 = inlined_call_operand.vmem [shape: f32[2,1,8], index: 1, kind: input, shape index: {}]   ;;  %s1863_s2 = inlined_call_operand.vmem [shape: f32[1,32], index: 2, kind: input, shape index: {}]   ;;  %s1864_s3 = inlined_call_operand.vmem [shape: f32[1,32], index: 3, kind: input, shape index: {}]   ;;  %s1865_s4 = inlined_call_operand.vmem [shape: bf16[32,96], index: 4, kind: input, shape index: {}]   ;;  %s1866_s5 = inlined_call_operand.vmem [shape: bf16[2,16,32], index: 5, kind: input, shape index: {}]   ;;  %s1867_s6 = inlined_call_operand.vmem [shape: f32[1,32], index: 6, kind: input, shape index: {}]   ;;  %s1868_s7 = inlined_call_operand.vmem [shape: f32[1,32], index: 7, kind: input, shape index: {}]   ;;  %s1869_s8 = inlined_call_operand.vmem [shape: f32[1,32], index: 8, kind: input, shape index: {}]   ;;  %s1870_s9 = inlined_call_operand.vmem [shape: bf16[32,128], index: 9, kind: input, shape index: {}]   ;;  %s1871_s10 = inlined_call_operand.vmem [shape: f32[1,128], index: 10, kind: input, shape index: {}]   ;;  %s1872_s11 = inlined_call_operand.vmem [shape: bf16[128,32], index: 11, kind: input, shape index: {}]   ;;  %s1873_s12 = inlined_call_operand.vmem [shape: f32[1,32], index: 12, kind: input, shape index: {}]   ;;  %s1874_s13 = inlined_call_operand.hbm [shape: f32[2,8,32], index: 13, kind: output, shape index: {}]  }
   0x1   :  { %1875 = sst [smem:[#allocation5_spill]] %s1861_s0 }
   0x2   :  { %1876 = sst [smem:[#allocation6_spill]] %s1862_s1 }
   0x3   :  { %1877 = sst [smem:[#allocation7_spill]] %s1863_s2 }
   0x4   :  { %18 = vsyncpa [#allocation3], 0 }
   0x5   :  { %20 = vsyncpa [#allocation3 + $0x1], 0  ;;  %s1624_s25 = smov 0   ;;  %s1626_s26 = smov 0  }
   0x6   :  { %s1628_s27 = smov 0   ;;  %s1630_s28 = smov 0  }
   0x7 LB: > { %s1645_s29 = sadd.s32 4294967295, %s1544_s28   ;;  %s1263_s30 = sadd.s32 4294967294, %s1544_s28   ;;  %s1544_s28 = sphi %s1630_s28, %s1886_s28   ;;  %s1540_s27 = sphi %s1628_s27, %s1885_s27   ;;  %s1536_s26 = sphi %s1626_s26, %s1884_s26   ;;  %s1532_s25 = sphi %s1624_s25, %s1883_s25  }
   0x8   : > { %s1649_s14 = sadd.s32 1, %s1544_s28   ;;  %s316_s15 = sadd.s32 1, %s1540_s27 }
   0x9   : > { %s313_s16 = ssub.s32 %s1544_s28, %s1649_s14  ;;  %p326_p0 = scmp.ne.s32.totalorder %s1540_s27, %s1536_s26 }
   0xa   : > { %p314_p1 = scmp.eq.s32.totalorder %s313_s16, 0  ;;  %p327_p2 = scmp.eq.s32.totalorder %s1645_s29, 1 }
   0xb   : > { %p332_p3 = scmp.ne.s32.totalorder %s1536_s26, %s1532_s25  ;;  %p333_p4 = scmp.eq.s32.totalorder %s1263_s30, 1 }
   0xc   : > { %s1660_s17 = scalar_select %p314_p1, %s1540_s27, %s316_s15  }
   0xd   : > { %p1662_p5 = por %p327_p2, %p326_p0  ;;  %p1666_p6 = por %p333_p4, %p332_p3 }
   0xe   : > { %p1266_p7 = scmp.ge.s32.totalorder %s1544_s28, 1  ;;  %p397_p8 = scmp.lt.s32.totalorder %s1544_s28, 3 }
  0x10   : > { %p398_p9 = pnand %p1266_p7, %p397_p8 }
  0x11   : > { %p443_p10 = scmp.lt.s32.totalorder (!%p398_p9), %s1645_s29, 1  ;;  %vm454_vm0 = vcmask (!%p398_p9), 261120   ;;  %s1880_s0 = sld [smem:[#allocation5_spill]] (!%p398_p9)  ;;  %v1450_v7 = vld [vmem:[%s1865_s4] sm:$0xff] (!%p398_p9)   ;;  %v1546_v8 = vmov (!%p398_p9), 0.0   ;;  %vm1547_vm1 = vmmov (!%p398_p9), 0   ;;  %v544_v28 = vlaneseq (!%p398_p9) }
  0x12   : > { %401 = sbr.rel (%p398_p9) target bundleno = 2653 (0xa5d), region = 72  ;;  %1334 = vmatprep.subr.bf16.mxu0 (!%p398_p9), %v1546_v8  ;;  %1338 = vmatprep.mubr.msk.bf16.mxu0 (!%p398_p9), %vm1547_vm1, %v1546_v8  ;;  %v1451_v9 = vld [vmem:[%s1865_s4 + $0x8] sm:$0xff] (!%p398_p9)   ;;  %s1881_s2 = sld [smem:[#allocation7_spill]] (!%p398_p9)  ;;  %v1270_v16 = vld [vmem:[%s1864_s3] ss:$0 sm:$0xff] (!%p398_p9)  ;;  %vm560_vm2 = vcmask (!%p398_p9), 130048  }
  0x13   : > { %1335 = vmatpush3.bf16.msra.mxu0 (!%p398_p9), %v1450_v7  ;;  %1358 = vmatprep.subr.bf16.mxu1 (!%p398_p9), %v1546_v8  ;;  %s1548_s15 = smov (!%p398_p9), 96   ;;  %s1549_s16 = smov (!%p398_p9), 64   ;;  %vm657_vm3 = vcmask (!%p398_p9), 1043456   ;;  %v545_v29 = vshrl.u32 (!%p398_p9), %v544_v28, 7  ;;  %v547_v30 = vand.u32 (!%p398_p9), 127, %v544_v28  ;;  %vm635_vm5 = vcmask (!%p398_p9), 64512  }
  0x14   : > { %1336 = vmatprep.subr.bf16.mxu0 (!%p398_p9), %v1546_v8  ;;  %1360 = vmatprep.mubr.msk.bf16.mxu1 (!%p398_p9), %vm1547_vm1, %v1546_v8  ;;  %s1551_s22 = smov (!%p398_p9), 112   ;;  %s1882_s1 = sld [smem:[#allocation6_spill]] (!%p398_p9) }
  0x15   : > { %vm548_vm4 = vcmp.ge.s32.totalorder (!%p398_p9), %v545_v29, %v547_v30  ;;  %s1304_s23 = sshll.u32 (!%p398_p9), %s1645_s29, 7 }
  0x17   : > { %1337 = vmatpush3.bf16.msra.mxu0 (!%p398_p9), %v1451_v9 }
  0x18   : > { %1342 = vmatprep.subr.mxu0 (!%p398_p9), %v1546_v8  ;;  %v1269_v14 = vld [vmem:[%s1881_s2] ss:$0 sm:$0xff] (!%p398_p9) }
  0x19   : > { %s1674_s20 = scalar_select %p443_p10, %s1645_s29, 1 }
  0x1b   : > { %s1268_s21 = sshll.u32 %s1674_s20, 3  ;;  %s449_s30 = scalar_lea.vmem %s1882_s1, %s1674_s20 }
  0x1c   : > { %s446_s24 = scalar_lea.vmem %s1880_s0, %s1268_s21  ;;  %s1550_s21 = smov 80   ;;  %v1274_v31 = vld [vmem:[%s449_s30] ss:$0 sm:$0xff] }
  0x1d   : > { %v1680_v0 = vld [vmem:[%s446_s24] sm:$0xff]  ;;  %v555_v32 = vsel %vm548_vm4, %v1274_v31, -1e+09  ;;  %s440_s20 = sand.u32 1, %s1536_s26   ;;  %s1818_s1 = scalar_lea.hbm %s1874_s13, %s1304_s23 }
  0x1e   : > { %v455_v1 = vsel %vm454_vm0, %v1680_v0, 0.0  ;;  %s1182_s29 = scalar_lea.sflag [#allocation3], %s440_s20 }
  0x1f   : > { %456 = vadd.xlane.f32.xlu0 %v455_v1 }
  0xac   : > { %v457_v2 = vpop.xlane.xlu0 %456 }
  0xad   : > { %v459_v3 = vmul.f32 0.03125, %v457_v2 }
  0xaf   : > { %v460_v4 = vsub.f32 %v1680_v0, %v459_v3 }
  0xb1   : > { %v461_v5 = vmul.f32 %v460_v4, %v460_v4 }
  0xb3   : > { %v462_v6 = vsel %vm454_vm0, %v461_v5, 0.0  ;;  %v1452_v5 = vld [vmem:[%s1866_s5] sm:$0xff]  }
  0xb4   : > { %463 = vadd.xlane.f32.xlu0 %v462_v6 }
 0x141   : > { %v464_v10 = vpop.xlane.xlu0 %463 }
 0x142   : > { %v465_v11 = vmul.f32 0.03125, %v464_v10  ;;  %v1453_v10 = vld [vmem:[%s1866_s5 + $0x8] sm:$0xff]  }
 0x144   : > { %v466_v12 = vadd.f32 1e-05, %v465_v11 }
 0x146   : > { %1464 = vrsqrt.f32 %v466_v12 }
 0x150   : > { %v1465_v13 = vpop.eup %1464 }
 0x151   : > { %v468_v15 = vmul.f32 %v1465_v13, %v460_v4 }
 0x153   : > { %v475_v17 = vmul.f32 %v1269_v14, %v468_v15 }
 0x155   : > { %v482_v18 = vadd.f32 %v1270_v16, %v475_v17 }
 0x157   : > { %v483_v19 = vpack.c.bf16 %v482_v18, %v482_v18 }
 0x159   : > { %1339 = vmatmul.mubr.msk.bf16.vlgmr.msra.gmra.mrb[0].mxu0 %vm454_vm0, %v483_v19 }
 0x15a   : > { %1344 = vmatprep.mubr.msk.f32.mxu0 %vm1547_vm1, %v1546_v8 }
 0x22c   : > { %v537_v20 = vpop.f32.mrb[0].mxu0 }
 0x22d   : > { %558 = vrot.lane.b32.xlu1 %v537_v20, %s1548_s15  ;;  %v1340_v21 = vpop.f32.mrb[1].mxu0  ;;  %v556_v22 = vpack.c.bf16 %v537_v20, %v537_v20  ;;  %s1552_s15 = smov 48  }
 0x22e   : > { %v540_v23 = vpop.f32.mrb[2].mxu0 }
 0x22f   : > { %652 = vrot.lane.b32.xlu0 %v556_v22, %s1549_s16  ;;  %v1341_v24 = vpop.f32.mrb[3].mxu0  ;;  %s1267_s16 = sshll.u32 %s440_s20, 3 }
 0x230   : > { %s442_s24 = scalar_lea.vmem [#allocation2], %s1267_s16 }
 0x231   : > { %s1195_s30 = sshll.u32 %s442_s24, 4  ;;  %s1820_s30 = int_to_ptr.vmem [resolvable:$true] %s1195_s30 }
 0x232   : > { %s1482_s16 = scalar_lea.vmem %s1820_s30, 128 }
 0x233   : > { %709 = vrot.lane.b32.xlu0 %v537_v20, %s1550_s21  ;;  %p1483_p11 = scmp.ne.s32.totalorder %s1820_s30, %s1482_s16  ;;  %s1553_s21 = smov [#allocation2]  }
 0x235   : > { %p1484_p12 = pnand %p1483_p11, %p1662_p5 }
 0x237   : > { %707 = vrot.lane.b32.xlu0 %v537_v20, %s1551_s22  ;;  %p1485_p13 = pneg %p1484_p12  ;;  %s1486_s22 = sshll.u32 %s1553_s21, 4  ;;  %s1487_s22 = int_to_ptr.vmem [resolvable:$false] %s1486_s22 }
 0x238   : > { %s1488_s2 = scalar_lea.vmem %s1487_s22, 256  ;;  %p1489_p0 = scmp.lt.s32.totalorder %s1820_s30, %s1487_s22 }
 0x239   : > { %p1490_p1 = scmp.lt.s32.totalorder %s1488_s2, %s1482_s16 }
 0x23b   : > { %p1491_p2 = por %p1490_p1, %p1489_p0 }
 0x23d   : > { %p1492_p3 = pnand %p1491_p2, %p1485_p13 }
 0x29f   : > { %v559_v25 = vpop.permute.xlu1 %558 }
 0x2a0   : > { %1343 = vmatpush3.xpose.msk.msra.mxu0 %vm560_vm2, %v559_v25 }
 0x2a1   : > { %v653_v26 = vpop.permute.xlu0 %652  ;;  %1347 = vmatprep.subr.bf16.mxu0 %v1546_v8 }
 0x2a2   : > { %v659_v27 = vsel %vm657_vm3, %v653_v26, 0 }
 0x2a3   : > { %1345 = vmatmul.mubr.msk.f32.vlgmr.msra.gmra.mrb[4].mxu0 %vm560_vm2, %v537_v20 }
 0x2a4   : > { %1348 = vmatpush3.bf16.msra.mxu0 %v659_v27  ;;  %1349 = vmatprep.mubr.msk.bf16.mxu0 %vm1547_vm1, %v1546_v8 }
 0x2a5   : > { %1353 = vmatprep.subr.mxu0 %v1546_v8  ;;  %v710_v45 = vpop.permute.xlu0 %709 }
 0x2a9   : > { %v708_v46 = vpop.permute.xlu0 %707 }
 0x376   : > { %v631_v33 = vpop.f32.mrb[4].mxu0 }
 0x377   : > { %v632_v34 = vadd.f32 %v631_v33, %v555_v32  ;;  %v1346_v35 = vpop.f32.mrb[5].mxu0 }
 0x379   : > { %v636_v36 = vsel %vm635_vm5, %v632_v34, -inf }
 0x37a   : > { %637 = vmax.xlane.f32.xlu1 %v636_v36 }
 0x38b   : > { %800 = vrot.lane.b32.xlu1 %v556_v22, %s1552_s15 }
 0x407   : > { %v638_v37 = vpop.xlane.xlu1 %637 }
 0x408   : > { %v642_v38 = vsub.f32 %v632_v34, %v638_v37  ;;  %v639_v47 = vsub.f32 -inf, %v638_v37 }
 0x40a   : > { %v643_v39 = vmul.f32 1.442695, %v642_v38  ;;  %v640_v48 = vmul.f32 1.442695, %v639_v47 }
 0x40b   : > { %v801_v40 = vpop.permute.xlu1 %800 }
 0x40c   : > { %v806_v41 = vsel %vm657_vm3, %v801_v40, 0  ;;  %1466 = vpow2.f32 %v643_v39 }
 0x40d   : > { %1359 = vmatpush3.bf16.msra.mxu1 %v806_v41  ;;  %1468 = vpow2.f32 %v640_v48 }
 0x40e   : > { %1370 = vmatprep.subr.bf16.mxu1 %v1546_v8 }
 0x416   : > { %v1467_v42 = vpop.eup %1466 }
 0x417   : > { %v646_v43 = vsel %vm635_vm5, %v1467_v42, 0.0  ;;  %v650_v44 = vpack.c.bf16 %v1467_v42, %v1467_v42  ;;  %v1469_v49 = vpop.eup %1468 }
 0x418   : > { %647 = vadd.xlane.f32.xlu1 %v646_v43  ;;  %v645_v51 = vmul.f32 0.0, %v1469_v49  ;;  %v1454_v43 = vld [vmem:[%s1870_s9] sm:$0xff]  }
 0x419   : > { %1350 = vmatmul.mubr.msk.bf16.vlgmr.msra.gmra.mrb[8].mxu0 %vm635_vm5, %v650_v44  ;;  %v1456_v44 = vld [vmem:[%s1872_s11] sm:$0xff]  }
 0x41a   : > { %1354 = vmatpush3.xpose.msk.msra.mxu0 %vm560_vm2, %v710_v45  ;;  %1355 = vmatprep.mubr.msk.f32.mxu0 %vm1547_vm1, %v1546_v8  ;;  %v1288_v49 = vld [vmem:[%s1868_s7] ss:$0 sm:$0xff] }
 0x41b   : > { %1364 = vmatprep.subr.bf16.mxu0 %v1546_v8 }
 0x421   : > { %1356 = vmatmul.mubr.msk.f32.vlgmr.msra.gmra.mrb[6].mxu0 %vm560_vm2, %v708_v46 }
 0x422   : > { %1366 = vmatprep.mubr.msk.bf16.mxu0 %vm1547_vm1, %v1546_v8  ;;  %1365 = vmatpush3.bf16.msra.mxu0 %v1453_v10 }
 0x423   : > { %1376 = vmatprep.subr.bf16.mxu0 %v1546_v8 }
 0x4a5   : > { %v648_v50 = vpop.xlane.xlu1 %647 }
 0x4a6   : > { %v649_v52 = vadd.f32 %v648_v50, %v645_v51 }
 0x4a8   : > { %1470 = vrcp.f32 %v649_v52 }
 0x4b2   : > { %v1471_v56 = vpop.eup %1470 }
 0x4ec   : > { %v695_v53 = vpop.f32.mrb[8].mxu0 }
 0x4ed   : > { %v701_v54 = vadd.f32 %v695_v53, %v645_v51  ;;  %v1351_v55 = vpop.f32.mrb[9].mxu0  ;;  %v1289_v51 = vld [vmem:[%s1869_s8] ss:$0 sm:$0xff] }
 0x4ee   : > { %v698_v57 = vpop.f32.mrb[10].mxu0  ;;  %v1457_v55 = vld [vmem:[%s1872_s11 + $0x8] sm:$0xff]  }
 0x4ef   : > { %v703_v58 = vmul.f32 %v1471_v56, %v701_v54  ;;  %v1352_v59 = vpop.f32.mrb[11].mxu0  ;;  %v1458_v56 = vld [vmem:[%s1872_s11 + $0x10] sm:$0xff]   ;;  %v1459_v57 = vld [vmem:[%s1872_s11 + $0x18] sm:$0xff]  }
 0x4f0   : > { %v1461_v59 = vld [vmem:[%s1872_s11 + $0x28] sm:$0xff]  }
 0x4f1   : > { %v704_v9 = vpack.c.bf16 %v703_v58, %v703_v58  ;;  %v1460_v58 = vld [vmem:[%s1872_s11 + $0x20] sm:$0xff]  }
 0x4f4   : > { %v781_v60 = vpop.f32.mrb[6].mxu0 }
 0x4f5   : > { %v782_v61 = vadd.f32 %v781_v60, %v555_v32  ;;  %v1357_v62 = vpop.f32.mrb[7].mxu0  ;;  %v1287_v32 = vld [vmem:[%s1867_s6] ss:$0 sm:$0xff]  ;;  %v1462_v60 = vld [vmem:[%s1872_s11 + $0x30] sm:$0xff]  }
 0x4f6   : > { %v1290_v62 = vld [vmem:[%s1871_s10] ss:$0 sm:$0xff] }
 0x4f7   : > { %v785_v63 = vsel %vm635_vm5, %v782_v61, -inf }
 0x4f8   : > { %786 = vmax.xlane.f32.xlu0 %v785_v63 }
 0x585   : > { %v787_v1 = vpop.xlane.xlu0 %786 }
 0x586   : > { %v791_v2 = vsub.f32 %v782_v61, %v787_v1  ;;  %v788_v11 = vsub.f32 -inf, %v787_v1  ;;  %v1463_v61 = vld [vmem:[%s1872_s11 + $0x38] sm:$0xff]  }
 0x588   : > { %v792_v3 = vmul.f32 1.442695, %v791_v2  ;;  %v789_v12 = vmul.f32 1.442695, %v788_v11 }
 0x58a   : > { %1472 = vpow2.f32 %v792_v3 }
 0x58b   : > { %1474 = vpow2.f32 %v789_v12 }
 0x594   : > { %v1473_v4 = vpop.eup %1472 }
 0x595   : > { %v795_v6 = vsel %vm635_vm5, %v1473_v4, 0.0  ;;  %v799_v7 = vpack.c.bf16 %v1473_v4, %v1473_v4  ;;  %v1475_v13 = vpop.eup %1474 }
 0x596   : > { %796 = vadd.xlane.f32.xlu0 %v795_v6  ;;  %v794_v15 = vmul.f32 0.0, %v1475_v13 }
 0x597   : > { %1361 = vmatmul.mubr.msk.bf16.vlgmr.msra.gmra.mrb[0].mxu1 %vm635_vm5, %v799_v7 }
 0x598   : > { %1371 = vmatpush3.bf16.msra.mxu1 %v1452_v5  ;;  %1372 = vmatprep.mubr.msk.bf16.mxu1 %vm1547_vm1, %v1546_v8 }
 0x599   : > { %1384 = vmatprep.subr.bf16.mxu1 %v1546_v8 }
 0x59f   : > { %1373 = vmatmul.mubr.msk.bf16.vlgmr.msra.gmra.mrb[4].mxu1 %vm560_vm2, %v704_v9 }
 0x5a0   : > { %1400 = vmatprep.mubr.msk.bf16.mxu1 %vm1547_vm1, %v1546_v8  ;;  %1385 = vmatpush3.bf16.msra.mxu1 %v1456_v44 }
 0x5a1   : > { %1386 = vmatprep.subr.bf16.mxu1 %v1546_v8 }
 0x5a4   : > { %1387 = vmatpush3.bf16.msra.mxu1 %v1457_v55 }
 0x5a5   : > { %1388 = vmatprep.subr.bf16.mxu1 %v1546_v8 }
 0x5a8   : > { %1389 = vmatpush3.bf16.msra.mxu1 %v1458_v56 }
 0x5a9   : > { %1390 = vmatprep.subr.bf16.mxu1 %v1546_v8 }
 0x5ac   : > { %1391 = vmatpush3.bf16.msra.mxu1 %v1459_v57 }
 0x5ad   : > { %1392 = vmatprep.subr.bf16.mxu1 %v1546_v8 }
 0x5b0   : > { %1393 = vmatpush3.bf16.msra.mxu1 %v1460_v58 }
 0x5b1   : > { %1394 = vmatprep.subr.bf16.mxu1 %v1546_v8 }
 0x5b4   : > { %1395 = vmatpush3.bf16.msra.mxu1 %v1461_v59 }
 0x5b5   : > { %1396 = vmatprep.subr.bf16.mxu1 %v1546_v8 }
 0x5b8   : > { %1397 = vmatpush3.bf16.msra.mxu1 %v1462_v60 }
 0x5b9   : > { %1398 = vmatprep.subr.bf16.mxu1 %v1546_v8 }
 0x5bc   : > { %1399 = vmatpush3.bf16.msra.mxu1 %v1463_v61 }
 0x623   : > { %v797_v14 = vpop.xlane.xlu0 %796 }
 0x624   : > { %v798_v16 = vadd.f32 %v797_v14, %v794_v15 }
 0x626   : > { %1476 = vrcp.f32 %v798_v16 }
 0x630   : > { %v1477_v20 = vpop.eup %1476 }
 0x66a   : > { %v842_v17 = vpop.f32.mrb[0].mxu1 }
 0x66b   : > { %v848_v18 = vadd.f32 %v842_v17, %v794_v15  ;;  %v1362_v19 = vpop.f32.mrb[1].mxu1  ;;  %v1294_v15 = vld [vmem:[%s1873_s12] ss:$0 sm:$0xff] }
 0x66c   : > { %v845_v21 = vpop.f32.mrb[2].mxu1 }
 0x66d   : > { %v850_v22 = vmul.f32 %v1477_v20, %v848_v18  ;;  %v1363_v23 = vpop.f32.mrb[3].mxu1 }
 0x66f   : > { %v851_v24 = vpack.c.bf16 %v850_v22, %v850_v22 }
 0x671   : > { %1367 = vmatmul.mubr.msk.bf16.vlgmr.msra.gmra.mrb[12].mxu0 %vm560_vm2, %v851_v24 }
 0x672   : > { %v947_v25 = vpop.f32.mrb[4].mxu1  ;;  %1380 = vmatprep.mubr.msk.bf16.mxu0 %vm1547_vm1, %v1546_v8  ;;  %1377 = vmatpush3.bf16.msra.mxu0 %v1454_v43 }
 0x673   : > { %v1374_v26 = vpop.f32.mrb[5].mxu1  ;;  %1378 = vmatprep.subr.bf16.mxu0 %v1546_v8 }
 0x674   : > { %v950_v27 = vpop.f32.mrb[6].mxu1 }
 0x675   : > { %v1375_v28 = vpop.f32.mrb[7].mxu1 }
 0x744   : > { %v898_v29 = vpop.f32.mrb[12].mxu0 }
 0x745   : > { %v948_v30 = vadd.f32 %v947_v25, %v898_v29  ;;  %v1368_v31 = vpop.f32.mrb[13].mxu0 }
 0x746   : > { %v901_v33 = vpop.f32.mrb[14].mxu0 }
 0x747   : > { %v953_v34 = vadd.f32 %v948_v30, %v1680_v0  ;;  %v1369_v35 = vpop.f32.mrb[15].mxu0  ;;  %v1455_v0 = vld [vmem:[%s1870_s9 + $0x8] sm:$0xff]  }
 0x748   : > { %1379 = vmatpush3.bf16.msra.mxu0 %v1455_v0 }
 0x749   : > { %v1755_v36 = vadd.f32 %v1287_v32, %v953_v34 }
 0x74b   : > { %v964_v37 = vsel %vm454_vm0, %v1755_v36, 0.0 }
 0x74c   : > { %965 = vadd.xlane.f32.xlu0 %v964_v37 }
 0x7d9   : > { %v966_v38 = vpop.xlane.xlu0 %965 }
 0x7da   : > { %v967_v39 = vmul.f32 0.03125, %v966_v38 }
 0x7dc   : > { %v968_v40 = vsub.f32 %v1755_v36, %v967_v39 }
 0x7de   : > { %v969_v41 = vmul.f32 %v968_v40, %v968_v40 }
 0x7e0   : > { %v970_v42 = vsel %vm454_vm0, %v969_v41, 0.0 }
 0x7e1   : > { %971 = vadd.xlane.f32.xlu0 %v970_v42 }
 0x86e   : > { %v972_v45 = vpop.xlane.xlu0 %971 }
 0x86f   : > { %v973_v46 = vmul.f32 0.03125, %v972_v45 }
 0x871   : > { %v974_v47 = vadd.f32 1e-05, %v973_v46 }
 0x873   : > { %1478 = vrsqrt.f32 %v974_v47 }
 0x87d   : > { %v1479_v48 = vpop.eup %1478 }
 0x87e   : > { %v976_v50 = vmul.f32 %v1479_v48, %v968_v40 }
 0x880   : > { %v983_v52 = vmul.f32 %v1288_v49, %v976_v50 }
 0x882   : > { %v990_v53 = vadd.f32 %v1289_v51, %v983_v52 }
 0x884   : > { %v991_v54 = vpack.c.bf16 %v990_v53, %v990_v53 }
 0x886   : > { %1381 = vmatmul.mubr.msk.bf16.vlgmr.msra.gmra.mrb[16].mxu0 %vm454_vm0, %v991_v54 }
 0x959   : > { %v1052_v63 = vpop.f32.mrb[16].mxu0 }
 0x95a   : > { %v1053_v1 = vadd.f32 %v1290_v62, %v1052_v63  ;;  %v1382_v2 = vpop.f32.mrb[17].mxu0 }
 0x95b   : > { %v1055_v3 = vpop.f32.mrb[18].mxu0 }
 0x95c   : > { %v1059_v4 = vmul.f32 0.044715, %v1053_v1  ;;  %v1383_v5 = vpop.f32.mrb[19].mxu0  ;;  %v1058_v8 = vmul.f32 0.5, %v1053_v1 }
 0x95e   : > { %v1060_v6 = vmul.f32 %v1059_v4, %v1053_v1 }
 0x960   : > { %v1061_v7 = vmul.f32 %v1060_v6, %v1053_v1 }
 0x962   : > { %v1062_v9 = vadd.f32 %v1061_v7, %v1053_v1 }
 0x964   : > { %v1063_v10 = vmul.f32 0.7978846, %v1062_v9 }
 0x966   : > { %1480 = vtanh.f32 %v1063_v10 }
 0x970   : > { %v1481_v11 = vpop.eup %1480 }
 0x971   : > { %v1065_v12 = vadd.f32 1.0, %v1481_v11 }
 0x973   : > { %v1066_v13 = vmul.f32 %v1065_v12, %v1058_v8 }
 0x975   : > { %v1067_v14 = vpack.c.bf16 %v1066_v13, %v1066_v13 }
 0x977   : > { %1401 = vmatmul.mubr.bf16.vlgmr.msra.gmra.mrb[8].mxu1 %v1067_v14 }
 0xa4a   : > { %v1173_v16 = vpop.f32.mrb[8].mxu1 }
 0xa4b   : > { %v1174_v17 = vadd.f32 %v1294_v15, %v1173_v16  ;;  %v1402_v18 = vpop.f32.mrb[9].mxu1 }
 0xa4c   : > { %v1176_v19 = vpop.f32.mrb[10].mxu1 }
 0xa4d   : > { %v1179_v20 = vadd.f32 %v1174_v17, %v1755_v36  ;;  %v1403_v21 = vpop.f32.mrb[11].mxu1 }
 0xa4f   : > { %1180 = vst.msk [vmem:[%s442_s24] sm:$0xff] %vm454_vm0, %v1179_v20 }
 0xa50   : > { %1495 = shalt.err (!%p1492_p3)
}
 0xa51   : > { %s1496_s0 = scalar_lea.hbm %s1818_s1, 128  ;;  %s1500_s24 = scalar_lea.hbm %s1874_s13, 256 }
 0xa52   : > { %p1497_p4 = scmp.ne.s32.totalorder %s1818_s1, %s1496_s0  ;;  %p1501_p9 = scmp.lt.u32.totalorder %s1818_s1, %s1874_s13 }
 0xa53   : > { %p1502_p10 = scmp.lt.u32.totalorder %s1500_s24, %s1496_s0  ;;  %p1504_p12 = scmp.lt.u32.totalorder %s1496_s0, %s1818_s1 }
 0xa54   : > { %p1498_p7 = pnand %p1497_p4, %p1662_p5 }
 0xa55   : > { %p1503_p11 = por %p1502_p10, %p1501_p9 }
 0xa56   : > { %p1499_p8 = pneg %p1498_p7 }
 0xa57   : > { %p1505_p13 = por %p1504_p12, %p1503_p11 }
 0xa59   : > { %p1506_p0 = pnand %p1505_p13, %p1499_p8 }
 0xa5b   : > { %1509 = shalt.err (!%p1506_p0)
}
 0xa5c   : > { %1404 = dma.vmem_to_hbm [thread:$0]  (%p1662_p5), %s1820_s30, 128, %s1818_s1, %s1182_s29  }
 0xa5d PF: > { %p1410_p1 = scmp.ge.s32.totalorder %s1544_s28, 2  ;;  %s1207_s2 = sand.u32 1, %s1532_s25  }
 0xa5e   : > { %s1208_s16 = scalar_lea.sflag [#allocation3], %s1207_s2 }
 0xa5f   : > { %p1407_p2 = pnand %p1410_p1, %p1666_p6 }
 0xa61   : > { %1527 = dma.done.wait (!%p1407_p2), %s1208_s16, 128  }
 0xa62   : > { %1529 = vsyncadd (!%p1407_p2), %s1208_s16, 4294967168  ;;  %p23_p3 = scmp.ge.s32.totalorder %s1649_s14, 4   ;;  %s1883_s25 = smov %s1536_s26 }
 0xa63   : > { %s1884_s26 = smov %s1540_s27  ;;  %s1885_s27 = smov %s1660_s17 }
 0xa64   : > { %s1886_s28 = smov %s1649_s14  ;;  %25 = sbr.rel (!%p23_p3) target bundleno = 7 (0x7), region = 111 }
 0xa6b   :  { %1213 = vsyncpa [#allocation3], 1 }
 0xa6c   :  { %1215 = vsyncpa [#allocation3 + $0x1], 1 }

</bundles_post_ra>
